<compile_context>
chip_gen: v7x
topology: tpu7x:2x2x1
jax: 0.10.0
libtpu: 0.0.40
codegen_flags: <defaults>
</compile_context>

<pallas_src>
import math

import jax
import jax.numpy as jnp
from jax.experimental import pallas as pl
from jax.experimental.pallas import tpu as pltpu


def _lcm(a, b):
    return a * b // math.gcd(a, b)


def _choose_layout(L, c, k, itemsize,
                   lane_w_target=1024,
                   x_block_bytes_target=3 * 1024 * 1024,
                   max_rows_per_block=256):
    """Pick (lane_w, S, n_rows, n_row_tiles, L_pad).

    lane_w: lane width, multiple of lcm(128, c)  -> unmasked lane-dense stores
            and a per-row weight pattern with channel = lane % c.
    S:      sublane rows per block, multiple of 8 (or the full row extent).
    L is zero-padded up to n_rows * lane_w; padding contributes zeros to the
    channel sums and is sliced off the output.
    """
    step = _lcm(128, c)
    lane_w = step * max(1, lane_w_target // step)
    if L <= lane_w:
        lane_w = step * pl.cdiv(L, step)      # single (padded) row covers L
    n_rows_raw = pl.cdiv(L, lane_w)

    # Rows per block sized so one x block moves a few MiB per pipelined step.
    s = x_block_bytes_target // max(1, k * lane_w * itemsize)
    s = max(8, min(max_rows_per_block, (s // 8) * 8))
    if n_rows_raw <= s:
        S = n_rows_raw                         # full extent: always legal
        n_rows = n_rows_raw
    else:
        S = s
        n_rows = pl.cdiv(n_rows_raw, S) * S    # pad rows to a multiple of S

    L_pad = n_rows * lane_w
    n_row_tiles = n_rows // S
    return lane_w, S, n_rows, n_row_tiles, L_pad


def _pick_reduction_chunks(n_row_tiles, b):
    """Outer 'parallel' split of the pass-1 reduction axis so v7x's two
    TensorCores stay busy when the batch is small (no effect on v5e/v6e)."""
    if n_row_tiles <= 1 or b >= 4:
        return 1
    for d in (2, 4, 3, 8):
        if n_row_tiles % d == 0:
            return d
    return 1


def _channel_partial_sum_kernel(x_ref, acc_ref):
    # x_ref: (k, S, lane_w)   acc_ref: (1, lane_w) f32, resident across the
    # innermost ('arbitrary') row-tile axis.
    @pl.when(pl.program_id(2) == 0)
    def _():
        acc_ref[...] = jnp.zeros_like(acc_ref)

    x = x_ref[...].astype(jnp.float32)
    xk = jnp.sum(x, axis=0)                              # k-reduce: VPU adds
    acc_ref[...] += jnp.sum(xk, axis=0, keepdims=True)   # (1, lane_w)


def _weighted_sum_kernel(x_ref, w_ref, o_ref):
    # x_ref: (k, S, lane_w)   w_ref: (k, 1, lane_w) lane pattern of softmax
    # weights (broadcast over the S sublane rows)   o_ref: (S, lane_w).
    # f32 arithmetic in-register (required on v5e; HBM-bound on v6e/v7x).
    x = x_ref[...].astype(jnp.float32)
    w = w_ref[...].astype(jnp.float32)
    o_ref[...] = jnp.sum(w * x, axis=0).astype(o_ref.dtype)


def split_attention(x_all, w1, w2):
    """x_all: (b, k, h, w, c);  w1: (c, c);  w2: (k*c, c).  Returns (b, h, w, c)."""
    b, k, h, w, c = x_all.shape
    L = h * w * c
    itemsize = jnp.dtype(x_all.dtype).itemsize
    lane_w, S, n_rows, n_row_tiles, L_pad = _choose_layout(L, c, k, itemsize)
    n_chunks = _pick_reduction_chunks(n_row_tiles, b)
    tiles_per_chunk = n_row_tiles // n_chunks

    # Lane-dense view; pad flat length to n_rows * lane_w (zeros are harmless:
    # they add nothing in pass 1 and are sliced off after pass 2).
    x = x_all.reshape(b, k, L)
    if L_pad != L:
        x = jnp.pad(x, ((0, 0), (0, 0), (0, L_pad - L)))
    x = x.reshape(b, k, n_rows, lane_w)

    # Conservative scoped-VMEM request: blocks total ~<12 MiB double-buffered,
    # safe on v5e/v6e (128 MiB) and v7x (64 MiB per TC).
    vmem_params = dict(vmem_limit_bytes=32 * 1024 * 1024)
    x_bytes = b * k * L_pad * itemsize

    # ---- pass 1: Pallas reduction over k and spatial (lane-partial sums) ----
    partial = pl.pallas_call(
        _channel_partial_sum_kernel,
        out_shape=jax.ShapeDtypeStruct((b * n_chunks, 1, lane_w), jnp.float32),
        grid=(b, n_chunks, tiles_per_chunk),
        in_specs=[pl.BlockSpec(
            (pl.Squeezed(), k, S, lane_w),
            lambda i, ch, t: (i, 0, ch * tiles_per_chunk + t, 0))],
        out_specs=pl.BlockSpec(
            (pl.Squeezed(), 1, lane_w),
            lambda i, ch, t: (i * n_chunks + ch, 0, 0)),
        compiler_params=pltpu.CompilerParams(
            dimension_semantics=("parallel", "parallel", "arbitrary"),
            **vmem_params),
        cost_estimate=pl.CostEstimate(
            flops=b * k * L_pad, transcendentals=0,
            bytes_accessed=x_bytes + b * n_chunks * lane_w * 4),
    )(x)

    # fold the lane-partials down to per-channel sums: a[b, c]
    a = partial.reshape(b, -1, c).sum(axis=1)

    # ---- tiny MLPs / exact GELU / softmax over k: hoisted to plain XLA ----
    h1 = jax.nn.gelu(a @ w1.T, approximate=False)               # (b, c)
    hat = (h1 @ w2.T).reshape(b, k, c)                          # (b, k, c)
    bar = jax.nn.softmax(hat, axis=1)                           # softmax over k
    # tiny per-row lane pattern (lane j -> channel j % c); broadcast over S
    # inside the kernel instead of materializing a (b, k, L) HBM array.
    bar_w = jnp.tile(bar, (1, 1, lane_w // c)).reshape(b, k, 1, lane_w)
    if x_all.dtype == jnp.bfloat16 or x_all.dtype == jnp.float16:
        bar_w = bar_w.astype(x_all.dtype)    # halve HBM read for 16-bit models
    else:
        bar_w = bar_w.astype(jnp.float32)

    # ---- pass 2: Pallas streaming weighted sum over k, tiled over rows ----
    # NOTE: if DMA latency is still exposed on v7x, add
    #       pipeline_mode=pl.Buffered(3) on the x in_spec (sweep 2 vs 3).
    out = pl.pallas_call(
        _weighted_sum_kernel,
        out_shape=jax.ShapeDtypeStruct((b, n_rows, lane_w), x_all.dtype),
        grid=(b, n_row_tiles),
        in_specs=[
            pl.BlockSpec((pl.Squeezed(), k, S, lane_w),
                         lambda i, r: (i, 0, r, 0)),
            pl.BlockSpec((pl.Squeezed(), k, 1, lane_w),
                         lambda i, r: (i, 0, 0, 0)),
        ],
        out_specs=pl.BlockSpec((pl.Squeezed(), S, lane_w),
                               lambda i, r: (i, r, 0)),
        compiler_params=pltpu.CompilerParams(
            dimension_semantics=("parallel", "parallel"), **vmem_params),
        cost_estimate=pl.CostEstimate(
            flops=2 * b * k * L_pad, transcendentals=0,
            bytes_accessed=(x_bytes + b * L_pad * itemsize
                            + b * k * lane_w * jnp.dtype(bar_w.dtype).itemsize)),
    )(x, bar_w)

    out = out.reshape(b, L_pad)
    if L_pad != L:
        out = out[:, :L]
    return out.reshape(b, h, w, c)


def split_attention_ref(x_all, w1, w2):
    # Pure-JAX reference mirroring the PyTorch forward exactly.
    b, k, h, w, c = x_all.shape
    x = x_all.reshape(b, k, h * w, c)
    a = jnp.sum(jnp.sum(x, axis=1), axis=1)                  # (b, c)
    h1 = jax.nn.gelu(a @ w1.T, approximate=False)            # exact GELU
    hat = (h1 @ w2.T).reshape(b, k, c)
    bar = jax.nn.softmax(hat, axis=1)[:, :, None, :]         # softmax over k
    return jnp.sum(bar * x, axis=1).reshape(b, h, w, c)


if __name__ == "__main__":
    # Module config: channel=c, k splits; SMALL shapes.
    B, K, H, W, C = 2, 3, 16, 16, 4

    key = jax.random.PRNGKey(0)
    kx, k1, k2 = jax.random.split(key, 3)

    x_all = jax.random.normal(kx, (B, K, H, W, C), dtype=jnp.float32)
    # Deterministic synthetic weights (shapes from nn.Linear(C, C) / nn.Linear(C, C*K))
    w1 = 0.3 * jax.random.normal(k1, (C, C), dtype=jnp.float32)        # mlp1.weight
    w2 = 0.3 * jax.random.normal(k2, (C * K, C), dtype=jnp.float32)    # mlp2.weight

    fwd = jax.jit(split_attention)   # fuses glue ops between the two kernels
    out = fwd(x_all, w1, w2)
    out = jax.block_until_ready(out)

    ref = split_attention_ref(x_all, w1, w2)
    assert out.shape == (B, H, W, C)
    assert jnp.allclose(out, ref, atol=1e-4, rtol=1e-4), "mismatch vs reference"

    print("KERNEL_OK")
</pallas_src>

<mosaic_0001>
module attributes {stable_mosaic.version = 11 : i64} {
  func.func @_channel_partial_sum_kernel(%arg0: i32, %arg1: i32, %arg2: i32, %arg3: memref<1x3x1x1024xf32, #tpu.memory_space<vmem>>, %arg4: memref<1x1x1024xf32, #tpu.memory_space<vmem>>) attributes {dimension_semantics = [#tpu.dimension_semantics<parallel>, #tpu.dimension_semantics<parallel>, #tpu.dimension_semantics<arbitrary>], iteration_bounds = array<i64: 2, 1, 1>, scalar_prefetch = 0 : i64, scratch_operands = 0 : i64, tpu.core_type = #tpu.core_type<tc>, window_params = [{transform_indices = @transform_0, window_bounds = array<i64: 1, 3, 1, 1024>}, {transform_indices = @transform_1, window_bounds = array<i64: 1, 1, 1024>}]} {
    %c0_i32 = arith.constant 0 : i32
    %0 = arith.cmpi eq, %arg2, %c0_i32 : i32
    %1 = arith.extui %0 : i1 to i32
    %c0_i32_0 = arith.constant 0 : i32
    %2 = arith.cmpi ne, %1, %c0_i32_0 : i32
    scf.if %2 {
      %cst_11 = arith.constant 0.000000e+00 : f32
      %14 = vector.broadcast %cst_11 : f32 to vector<1x1024xf32>
      %c0_12 = arith.constant 0 : index
      %c0_13 = arith.constant 0 : index
      %c0_14 = arith.constant 0 : index
      %15 = vector.load %arg4[%c0_12, %c0_13, %c0_14] : memref<1x1x1024xf32, #tpu.memory_space<vmem>>, vector<1x1x1024xf32>
      %16 = vector.shape_cast %15 : vector<1x1x1024xf32> to vector<1x1024xf32>
      %17 = vector.shape_cast %14 : vector<1x1024xf32> to vector<1x1x1024xf32>
      tpu.vector_store %arg4[%c0_12, %c0_13, %c0_14], %17 {strides = array<i32>} : memref<1x1x1024xf32, #tpu.memory_space<vmem>>, vector<1x1x1024xf32>,
    } else {
    }
    %c0 = arith.constant 0 : index
    %c0_1 = arith.constant 0 : index
    %c0_2 = arith.constant 0 : index
    %c0_3 = arith.constant 0 : index
    %3 = vector.load %arg3[%c0, %c0_1, %c0_2, %c0_3] : memref<1x3x1x1024xf32, #tpu.memory_space<vmem>>, vector<1x3x1x1024xf32>
    %4 = vector.shape_cast %3 : vector<1x3x1x1024xf32> to vector<3x1x1024xf32>
    %cst = arith.constant dense<0.000000e+00> : vector<1x1024xf32>
    %5 = vector.multi_reduction <add>, %4, %cst [0] : vector<3x1x1024xf32> to vector<1x1024xf32>
    %c0_4 = arith.constant 0 : index
    %c0_5 = arith.constant 0 : index
    %c0_6 = arith.constant 0 : index
    %6 = vector.load %arg4[%c0_4, %c0_5, %c0_6] : memref<1x1x1024xf32, #tpu.memory_space<vmem>>, vector<1x1x1024xf32>
    %7 = vector.shape_cast %6 : vector<1x1x1024xf32> to vector<1x1024xf32>
    %cst_7 = arith.constant dense<0.000000e+00> : vector<1024xf32>
    %8 = vector.multi_reduction <add>, %5, %cst_7 [0] : vector<1x1024xf32> to vector<1024xf32>
    %9 = vector.shape_cast %8 : vector<1024xf32> to vector<1x1024xf32>
    %10 = arith.addf %7, %9 : vector<1x1024xf32>
    %c0_8 = arith.constant 0 : index
    %c0_9 = arith.constant 0 : index
    %c0_10 = arith.constant 0 : index
    %11 = vector.load %arg4[%c0_8, %c0_9, %c0_10] : memref<1x1x1024xf32, #tpu.memory_space<vmem>>, vector<1x1x1024xf32>
    %12 = vector.shape_cast %11 : vector<1x1x1024xf32> to vector<1x1024xf32>
    %13 = vector.shape_cast %10 : vector<1x1024xf32> to vector<1x1x1024xf32>
    tpu.vector_store %arg4[%c0_8, %c0_9, %c0_10], %13 {strides = array<i32>} : memref<1x1x1024xf32, #tpu.memory_space<vmem>>, vector<1x1x1024xf32>,
    return
  }
  func.func @transform_0(%arg0: i32, %arg1: i32, %arg2: i32) -> (i32, i32, i32, i32) {
    %c1_i32 = arith.constant 1 : i32
    %0 = arith.muli %arg1, %c1_i32 : i32
    %1 = arith.addi %0, %arg2 : i32
    %c0_i32 = arith.constant 0 : i32
    %c0_i32_0 = arith.constant 0 : i32
    %c0_i32_1 = arith.constant 0 : i32
    return %arg0, %c0_i32, %1, %c0_i32_0 : i32, i32, i32, i32
  }
  func.func @transform_1(%arg0: i32, %arg1: i32, %arg2: i32) -> (i32, i32, i32) {
    %c1_i32 = arith.constant 1 : i32
    %0 = arith.muli %arg0, %c1_i32 : i32
    %1 = arith.addi %0, %arg1 : i32
    %c0_i32 = arith.constant 0 : i32
    %c0_i32_0 = arith.constant 0 : i32
    %c0_i32_1 = arith.constant 0 : i32
    return %1, %c0_i32, %c0_i32_0 : i32, i32, i32
  }
}

module attributes {stable_mosaic.version = 11 : i64} {
  func.func @_weighted_sum_kernel(%arg0: i32, %arg1: i32, %arg2: memref<1x3x1x1024xf32, #tpu.memory_space<vmem>>, %arg3: memref<1x3x1x1024xf32, #tpu.memory_space<vmem>>, %arg4: memref<1x1x1024xf32, #tpu.memory_space<vmem>>) attributes {dimension_semantics = [#tpu.dimension_semantics<parallel>, #tpu.dimension_semantics<parallel>], iteration_bounds = array<i64: 2, 1>, scalar_prefetch = 0 : i64, scratch_operands = 0 : i64, tpu.core_type = #tpu.core_type<tc>, window_params = [{transform_indices = @transform_0, window_bounds = array<i64: 1, 3, 1, 1024>}, {transform_indices = @transform_1, window_bounds = array<i64: 1, 3, 1, 1024>}, {transform_indices = @transform_2, window_bounds = array<i64: 1, 1, 1024>}]} {
    %c0 = arith.constant 0 : index
    %c0_0 = arith.constant 0 : index
    %c0_1 = arith.constant 0 : index
    %c0_2 = arith.constant 0 : index
    %0 = vector.load %arg2[%c0, %c0_0, %c0_1, %c0_2] : memref<1x3x1x1024xf32, #tpu.memory_space<vmem>>, vector<1x3x1x1024xf32>
    %1 = vector.shape_cast %0 : vector<1x3x1x1024xf32> to vector<3x1x1024xf32>
    %c0_3 = arith.constant 0 : index
    %c0_4 = arith.constant 0 : index
    %c0_5 = arith.constant 0 : index
    %c0_6 = arith.constant 0 : index
    %2 = vector.load %arg3[%c0_3, %c0_4, %c0_5, %c0_6] : memref<1x3x1x1024xf32, #tpu.memory_space<vmem>>, vector<1x3x1x1024xf32>
    %3 = vector.shape_cast %2 : vector<1x3x1x1024xf32> to vector<3x1x1024xf32>
    %4 = arith.mulf %3, %1 : vector<3x1x1024xf32>
    %cst = arith.constant dense<0.000000e+00> : vector<1x1024xf32>
    %5 = vector.multi_reduction <add>, %4, %cst [0] : vector<3x1x1024xf32> to vector<1x1024xf32>
    %c0_7 = arith.constant 0 : index
    %c0_8 = arith.constant 0 : index
    %c0_9 = arith.constant 0 : index
    %6 = vector.load %arg4[%c0_7, %c0_8, %c0_9] : memref<1x1x1024xf32, #tpu.memory_space<vmem>>, vector<1x1x1024xf32>
    %7 = vector.shape_cast %6 : vector<1x1x1024xf32> to vector<1x1024xf32>
    %8 = vector.shape_cast %5 : vector<1x1024xf32> to vector<1x1x1024xf32>
    tpu.vector_store %arg4[%c0_7, %c0_8, %c0_9], %8 {strides = array<i32>} : memref<1x1x1024xf32, #tpu.memory_space<vmem>>, vector<1x1x1024xf32>,
    return
  }
  func.func @transform_0(%arg0: i32, %arg1: i32) -> (i32, i32, i32, i32) {
    %c0_i32 = arith.constant 0 : i32
    %c0_i32_0 = arith.constant 0 : i32
    %c0_i32_1 = arith.constant 0 : i32
    return %arg0, %c0_i32, %arg1, %c0_i32_0 : i32, i32, i32, i32
  }
  func.func @transform_1(%arg0: i32, %arg1: i32) -> (i32, i32, i32, i32) {
    %c0_i32 = arith.constant 0 : i32
    %c0_i32_0 = arith.constant 0 : i32
    %c0_i32_1 = arith.constant 0 : i32
    %c0_i32_2 = arith.constant 0 : i32
    return %arg0, %c0_i32, %c0_i32_0, %c0_i32_1 : i32, i32, i32, i32
  }
  func.func @transform_2(%arg0: i32, %arg1: i32) -> (i32, i32, i32) {
    %c0_i32 = arith.constant 0 : i32
    %c0_i32_0 = arith.constant 0 : i32
    return %arg0, %arg1, %c0_i32 : i32, i32, i32
  }
}

</mosaic_0001>

<bundles_post_ra>
// kernel: split_attention.2
= control target key start
LH: loop header
LB: loop body
LE: loop exit
PB: predicated region body
PF: predicated region fallthrough
CT: control target
= control target key end

     0   :  { %s542_s6 = smov 0   ;;  %s544_s7 = smov 0   ;;  %s641_s0 = inlined_call_operand.vmem [shape: f32[2,3,1,1024], index: 0, kind: input, shape index: {}]   ;;  %s642_s1 = inlined_call_operand.vmem [shape: f32[2,1,1024], index: 1, kind: output, shape index: {}]  }
   0x1   :  { %s546_s8 = smov 0  }
   0x2 LB: > { %s30_s9 = sadd.s32 1, %s525_s7  ;;  %p476_p0 = scmp.ge.s32.totalorder %s529_s8, 1  ;;  %s529_s8 = sphi %s546_s8, %s11_s8   ;;  %s525_s7 = sphi %s544_s7, %s644_s7   ;;  %s521_s6 = sphi %s542_s6, %s643_s6  }
   0x3   : > { %p32_p1 = scmp.ge.s32.totalorder %s30_s9, 2  ;;  %p117_p2 = scmp.lt.s32.totalorder %s529_s8, 3 }
   0x5   : > { %s646_s9 = smov (%p32_p1, %s30_s9), 0  ;;  %p118_p3 = pnand %p476_p0, %p117_p2 }
   0x6   : > { %p142_p4 = scmp.lt.s32.totalorder (!%p118_p3), %s521_s6, 1  ;;  %v168_v0 = vlaneseq (!%p118_p3)  ;;  %v531_v1 = vmov (!%p118_p3), 1966171168   ;;  %vm288_vm0 = vcmask (!%p118_p3), 1040384  }
   0x7   : > { %121 = sbr.rel (%p118_p3) target bundleno = 49 (0x31), region = 24  ;;  %v351_v2 = vunpack.c.l.s4 (!%p118_p3), %v531_v1 }
   0x8   : > { %v169_v3 = vshrl.u32 (!%p118_p3), %v168_v0, 7 }
   0x9   : > { %v352_v4 = vunpack.c.0.s8 (!%p118_p3), %v351_v2 }
   0xa   : > { %v170_v5 = vsub.s32 (!%p118_p3), 0, %v169_v3  ;;  %v174_v6 = vsub.s32 (!%p118_p3), 1, %v169_v3  ;;  %v178_v7 = vsub.s32 (!%p118_p3), 2, %v169_v3  ;;  %v182_v8 = vsub.s32 (!%p118_p3), 3, %v169_v3 }
   0xb   : > { %v186_v9 = vsub.s32 (!%p118_p3), 4, %v169_v3  ;;  %v190_v10 = vsub.s32 (!%p118_p3), 5, %v169_v3  ;;  %v563_v11 = vsub.s32 (!%p118_p3), 6, %v169_v3  ;;  %v565_v12 = vsub.s32 (!%p118_p3), 7, %v169_v3 }
   0xc   : > { %v574_v15 = vsub.s32 (!%p118_p3), %v352_v4, %v169_v3 }
   0xe   : > { %s648_s6 = smov (!%p142_p4, %s521_s6), 1 }
   0xf   : > { %s480_s10 = smul.u32 24, %s648_s6  ;;  %s477_s14 = sshll.u32 %s648_s6, 3 }
  0x10   : > { %s155_s17 = scalar_lea.vmem %s642_s1, %s477_s14 }
  0x11   : > { %s149_s13 = scalar_lea.vmem %s641_s0, %s480_s10 }
  0x12   : > { %v570_v13 = vld [vmem:[%s149_s13] sm:$0xff]  ;;  %v572_v14 = vld [vmem:[%s149_s13 + $0x8] sm:$0xff]  ;;  %v164_v20 = vld [vmem:[%s149_s13 + $0x10] sm:$0xff] }
  0x13   : > { %v171_v16 = vrot.slane %v570_v13, %v170_v5  ;;  %v175_v17 = vrot.slane %v570_v13, %v174_v6  ;;  %v179_v18 = vrot.slane %v570_v13, %v178_v7  ;;  %v183_v19 = vrot.slane %v570_v13, %v182_v8 }
  0x14   : > { %v187_v21 = vrot.slane %v570_v13, %v186_v9  ;;  %v191_v22 = vrot.slane %v570_v13, %v190_v10  ;;  %v195_v23 = vrot.slane %v570_v13, %v563_v11  ;;  %v199_v24 = vrot.slane %v570_v13, %v565_v12 }
  0x15   : > { %v203_v25 = vrot.slane %v572_v14, %v170_v5  ;;  %v207_v26 = vrot.slane %v572_v14, %v174_v6  ;;  %v211_v27 = vrot.slane %v572_v14, %v178_v7  ;;  %v215_v28 = vrot.slane %v572_v14, %v182_v8 }
  0x16   : > { %v219_v29 = vrot.slane %v572_v14, %v186_v9  ;;  %v223_v30 = vrot.slane %v572_v14, %v190_v10  ;;  %v227_v31 = vrot.slane %v572_v14, %v563_v11  ;;  %v231_v32 = vrot.slane %v572_v14, %v565_v12 }
  0x17   : > { %v235_v33 = vrot.slane %v164_v20, %v170_v5  ;;  %v239_v34 = vrot.slane %v164_v20, %v174_v6  ;;  %v243_v35 = vrot.slane %v164_v20, %v178_v7  ;;  %v247_v36 = vrot.slane %v164_v20, %v182_v8 }
  0x18   : > { %v251_v37 = vrot.slane %v164_v20, %v186_v9  ;;  %v255_v38 = vrot.slane %v164_v20, %v190_v10  ;;  %v259_v39 = vrot.slane %v164_v20, %v563_v11  ;;  %v263_v40 = vrot.slane %v164_v20, %v565_v12 }
  0x19   : > { %v289_v41 = vsel %vm288_vm0, %v171_v16, 0.0  ;;  %v290_v42 = vsel %vm288_vm0, %v203_v25, 0.0  ;;  %v292_v43 = vsel %vm288_vm0, %v235_v33, 0.0  ;;  %v294_v44 = vsel %vm288_vm0, %v175_v17, 0.0 }
  0x1a   : > { %v291_v45 = vadd.f32 %v290_v42, %v289_v41  ;;  %v295_v46 = vsel %vm288_vm0, %v207_v26, 0.0  ;;  %v297_v47 = vsel %vm288_vm0, %v239_v34, 0.0  ;;  %v299_v48 = vsel %vm288_vm0, %v179_v18, 0.0 }
  0x1b   : > { %v296_v49 = vadd.f32 %v295_v46, %v294_v44  ;;  %v300_v50 = vsel %vm288_vm0, %v211_v27, 0.0  ;;  %v302_v51 = vsel %vm288_vm0, %v243_v35, 0.0  ;;  %v304_v52 = vsel %vm288_vm0, %v183_v19, 0.0 }
  0x1c   : > { %v293_v53 = vadd.f32 %v292_v43, %v291_v45  ;;  %v301_v54 = vadd.f32 %v300_v50, %v299_v48  ;;  %v305_v55 = vsel %vm288_vm0, %v215_v28, 0.0  ;;  %v307_v56 = vsel %vm288_vm0, %v247_v36, 0.0 }
  0x1d   : > { %v298_v57 = vadd.f32 %v297_v47, %v296_v49  ;;  %v306_v58 = vadd.f32 %v305_v55, %v304_v52  ;;  %v309_v59 = vsel %vm288_vm0, %v187_v21, 0.0  ;;  %v310_v60 = vsel %vm288_vm0, %v219_v29, 0.0 }
  0x1e   : > { %v303_v61 = vadd.f32 %v302_v51, %v301_v54  ;;  %v311_v62 = vadd.f32 %v310_v60, %v309_v59  ;;  %v312_v63 = vsel %vm288_vm0, %v251_v37, 0.0  ;;  %v314_v0 = vsel %vm288_vm0, %v191_v22, 0.0 }
  0x1f   : > { %v308_v1 = vadd.f32 %v307_v56, %v306_v58  ;;  %v315_v2 = vsel %vm288_vm0, %v223_v30, 0.0  ;;  %v317_v3 = vsel %vm288_vm0, %v255_v38, 0.0  ;;  %v319_v4 = vsel %vm288_vm0, %v195_v23, 0.0 }
  0x20   : > { %v313_v5 = vadd.f32 %v312_v63, %v311_v62  ;;  %v316_v6 = vadd.f32 %v315_v2, %v314_v0  ;;  %v320_v7 = vsel %vm288_vm0, %v227_v31, 0.0  ;;  %v322_v8 = vsel %vm288_vm0, %v259_v39, 0.0 }
  0x21   : > { %v321_v9 = vadd.f32 %v320_v7, %v319_v4  ;;  %v324_v10 = vsel %vm288_vm0, %v199_v24, 0.0  ;;  %v325_v11 = vsel %vm288_vm0, %v231_v32, 0.0  ;;  %v327_v12 = vsel %vm288_vm0, %v263_v40, 0.0 }
  0x22   : > { %v318_v13 = vadd.f32 %v317_v3, %v316_v6  ;;  %v326_v14 = vadd.f32 %v325_v11, %v324_v10  ;;  %v346_v16 = vcombine.low %v293_v53, %v298_v57  ;;  %v347_v17 = vcombine.low %v303_v61, %v308_v1 }
  0x23   : > { %v323_v18 = vadd.f32 %v322_v8, %v321_v9 }
  0x24   : > { %v328_v19 = vadd.f32 %v327_v12, %v326_v14  ;;  %v348_v20 = vcombine.low %v313_v5, %v318_v13  ;;  %v356_v21 = vrot.slane %v346_v16, %v574_v15  ;;  %v363_v22 = vrot.slane %v347_v17, %v574_v15 }
  0x26   : > { %v349_v23 = vcombine.low %v323_v18, %v328_v19  ;;  %v370_v25 = vrot.slane %v348_v20, %v574_v15  ;;  %v378_v24 = vcombine.low %v356_v21, %v363_v22 }
  0x28   : > { %v377_v26 = vrot.slane %v349_v23, %v574_v15  ;;  %v386_v28 = vrot.slane %v378_v24, %v574_v15 }
  0x2a   : > { %v379_v27 = vcombine.low %v370_v25, %v377_v26 }
  0x2c   : > { %v393_v29 = vrot.slane %v379_v27, %v574_v15 }
  0x2e   : > { %v394_v30 = vcombine.low %v386_v28, %v393_v29 }
  0x30   : > { %397 = vst [vmem:[%s155_s17] sm:$0xff] %v394_v30 }
  0x31 PF: > { %s11_s8 = sadd.s32 1, %s529_s8   ;;  %s643_s6 = smov %s525_s7 }
  0x32   : > { %p8_p5 = scmp.ge.s32.totalorder %s11_s8, 4   ;;  %s644_s7 = smov %s646_s9 }
  0x34   :  { %10 = sbr.rel (!%p8_p5) target bundleno = 2 (0x2), region = 58 }

// kernel: split_attention.3
= control target key start
LH: loop header
LB: loop body
LE: loop exit
PB: predicated region body
PF: predicated region fallthrough
CT: control target
= control target key end

     0   :  { %s593_s9 = smov 0   ;;  %s595_s10 = smov 0   ;;  %s705_s0 = inlined_call_operand.vmem [shape: f32[2,3,1,1024], index: 0, kind: input, shape index: {}]   ;;  %s706_s1 = inlined_call_operand.vmem [shape: f32[2,3,1,1024], index: 1, kind: input, shape index: {}]   ;;  %s707_s2 = inlined_call_operand.vmem [shape: f32[2,1,1024], index: 2, kind: output, shape index: {}]  }
   0x1   :  { %s597_s11 = smov 0  }
   0x2 LB: > { %s24_s12 = sadd.s32 1, %s571_s10  ;;  %p523_p0 = scmp.ge.s32.totalorder %s575_s11, 1  ;;  %s575_s11 = sphi %s597_s11, %s12_s11   ;;  %s571_s10 = sphi %s595_s10, %s709_s10   ;;  %s567_s9 = sphi %s593_s9, %s708_s9  }
   0x3   : > { %p26_p1 = scmp.ge.s32.totalorder %s24_s12, 2  ;;  %p140_p2 = scmp.lt.s32.totalorder %s575_s11, 3 }
   0x5   : > { %s711_s12 = smov (%p26_p1, %s24_s12), 0  ;;  %p141_p3 = pnand %p523_p0, %p140_p2 }
   0x6   : > { %p172_p4 = scmp.lt.s32.totalorder (!%p141_p3), %s567_s9, 1  ;;  %v204_v0 = vlaneseq (!%p141_p3)  ;;  %v577_v2 = vmov (!%p141_p3), 1966171168   ;;  %vm324_vm0 = vcmask (!%p141_p3), 1040384  }
   0x7   : > { %144 = sbr.rel (%p141_p3) target bundleno = 52 (0x34), region = 28  ;;  %v378_v3 = vunpack.c.l.s4 (!%p141_p3), %v577_v2 }
   0x8   : > { %v205_v1 = vshrl.u32 (!%p141_p3), %v204_v0, 7 }
   0x9   : > { %v379_v6 = vunpack.c.0.s8 (!%p141_p3), %v378_v3 }
   0xa   : > { %v206_v4 = vsub.s32 (!%p141_p3), 0, %v205_v1  ;;  %v210_v5 = vsub.s32 (!%p141_p3), 1, %v205_v1  ;;  %v214_v10 = vsub.s32 (!%p141_p3), 2, %v205_v1  ;;  %v218_v11 = vsub.s32 (!%p141_p3), 3, %v205_v1 }
   0xb   : > { %v222_v12 = vsub.s32 (!%p141_p3), 4, %v205_v1  ;;  %v226_v16 = vsub.s32 (!%p141_p3), 5, %v205_v1  ;;  %v620_v17 = vsub.s32 (!%p141_p3), 6, %v205_v1  ;;  %v622_v18 = vsub.s32 (!%p141_p3), 7, %v205_v1 }
   0xc   : > { %v630_v22 = vsub.s32 (!%p141_p3), %v379_v6, %v205_v1 }
   0xe   : > { %s713_s9 = smov (!%p172_p4, %s567_s9), 1 }
   0xf   : > { %s527_s13 = smul.u32 24, %s713_s9  ;;  %s524_s20 = sshll.u32 %s713_s9, 3 }
  0x10   : > { %s191_s23 = scalar_lea.vmem %s707_s2, %s524_s20 }
  0x11   : > { %s179_s16 = scalar_lea.vmem %s705_s0, %s527_s13  ;;  %s183_s19 = scalar_lea.vmem %s706_s1, %s527_s13 }
  0x12   : > { %v192_v7 = vld [vmem:[%s179_s16] sm:$0xff]  ;;  %v193_v8 = vld [vmem:[%s179_s16 + $0x8] sm:$0xff]  ;;  %v194_v9 = vld [vmem:[%s179_s16 + $0x10] sm:$0xff] }
  0x13   : > { %v195_v13 = vld [vmem:[%s183_s19] sm:$0xff]  ;;  %v196_v14 = vld [vmem:[%s183_s19 + $0x8] sm:$0xff]  ;;  %v197_v15 = vld [vmem:[%s183_s19 + $0x10] sm:$0xff] }
  0x14   : > { %v624_v19 = vmul.f32 %v195_v13, %v192_v7  ;;  %v626_v20 = vmul.f32 %v196_v14, %v193_v8  ;;  %v628_v21 = vmul.f32 %v197_v15, %v194_v9 }
  0x16   : > { %v207_v23 = vrot.slane %v624_v19, %v206_v4  ;;  %v211_v24 = vrot.slane %v624_v19, %v210_v5  ;;  %v215_v25 = vrot.slane %v624_v19, %v214_v10  ;;  %v219_v26 = vrot.slane %v624_v19, %v218_v11 }
  0x17   : > { %v223_v27 = vrot.slane %v624_v19, %v222_v12  ;;  %v227_v28 = vrot.slane %v624_v19, %v226_v16  ;;  %v231_v29 = vrot.slane %v624_v19, %v620_v17  ;;  %v235_v30 = vrot.slane %v624_v19, %v622_v18 }
  0x18   : > { %v239_v31 = vrot.slane %v626_v20, %v206_v4  ;;  %v243_v32 = vrot.slane %v626_v20, %v210_v5  ;;  %v247_v33 = vrot.slane %v626_v20, %v214_v10  ;;  %v251_v34 = vrot.slane %v626_v20, %v218_v11 }
  0x19   : > { %v255_v35 = vrot.slane %v626_v20, %v222_v12  ;;  %v259_v36 = vrot.slane %v626_v20, %v226_v16  ;;  %v263_v37 = vrot.slane %v626_v20, %v620_v17  ;;  %v267_v38 = vrot.slane %v626_v20, %v622_v18 }
  0x1a   : > { %v271_v39 = vrot.slane %v628_v21, %v206_v4  ;;  %v275_v40 = vrot.slane %v628_v21, %v210_v5  ;;  %v279_v41 = vrot.slane %v628_v21, %v214_v10  ;;  %v283_v42 = vrot.slane %v628_v21, %v218_v11 }
  0x1b   : > { %v287_v43 = vrot.slane %v628_v21, %v222_v12  ;;  %v291_v44 = vrot.slane %v628_v21, %v226_v16  ;;  %v295_v45 = vrot.slane %v628_v21, %v620_v17  ;;  %v299_v46 = vrot.slane %v628_v21, %v622_v18 }
  0x1c   : > { %v325_v47 = vsel %vm324_vm0, %v207_v23, 0.0  ;;  %v326_v48 = vsel %vm324_vm0, %v239_v31, 0.0  ;;  %v328_v49 = vsel %vm324_vm0, %v271_v39, 0.0  ;;  %v330_v50 = vsel %vm324_vm0, %v211_v24, 0.0 }
  0x1d   : > { %v327_v51 = vadd.f32 %v326_v48, %v325_v47  ;;  %v331_v52 = vsel %vm324_vm0, %v243_v32, 0.0  ;;  %v333_v53 = vsel %vm324_vm0, %v275_v40, 0.0  ;;  %v335_v54 = vsel %vm324_vm0, %v215_v25, 0.0 }
  0x1e   : > { %v332_v55 = vadd.f32 %v331_v52, %v330_v50  ;;  %v336_v56 = vsel %vm324_vm0, %v247_v33, 0.0  ;;  %v338_v57 = vsel %vm324_vm0, %v279_v41, 0.0  ;;  %v340_v58 = vsel %vm324_vm0, %v219_v26, 0.0 }
  0x1f   : > { %v329_v59 = vadd.f32 %v328_v49, %v327_v51  ;;  %v337_v60 = vadd.f32 %v336_v56, %v335_v54  ;;  %v341_v61 = vsel %vm324_vm0, %v251_v34, 0.0  ;;  %v343_v62 = vsel %vm324_vm0, %v283_v42, 0.0 }
  0x20   : > { %v334_v63 = vadd.f32 %v333_v53, %v332_v55  ;;  %v342_v0 = vadd.f32 %v341_v61, %v340_v58  ;;  %v345_v1 = vsel %vm324_vm0, %v223_v27, 0.0  ;;  %v346_v2 = vsel %vm324_vm0, %v255_v35, 0.0 }
  0x21   : > { %v339_v3 = vadd.f32 %v338_v57, %v337_v60  ;;  %v347_v4 = vadd.f32 %v346_v2, %v345_v1  ;;  %v348_v5 = vsel %vm324_vm0, %v287_v43, 0.0  ;;  %v350_v6 = vsel %vm324_vm0, %v227_v28, 0.0 }
  0x22   : > { %v344_v7 = vadd.f32 %v343_v62, %v342_v0  ;;  %v351_v8 = vsel %vm324_vm0, %v259_v36, 0.0  ;;  %v353_v9 = vsel %vm324_vm0, %v291_v44, 0.0  ;;  %v355_v10 = vsel %vm324_vm0, %v231_v29, 0.0 }
  0x23   : > { %v349_v11 = vadd.f32 %v348_v5, %v347_v4  ;;  %v352_v12 = vadd.f32 %v351_v8, %v350_v6  ;;  %v356_v13 = vsel %vm324_vm0, %v263_v37, 0.0  ;;  %v358_v14 = vsel %vm324_vm0, %v295_v45, 0.0 }
  0x24   : > { %v357_v15 = vadd.f32 %v356_v13, %v355_v10  ;;  %v360_v16 = vsel %vm324_vm0, %v235_v30, 0.0  ;;  %v361_v17 = vsel %vm324_vm0, %v267_v38, 0.0  ;;  %v363_v18 = vsel %vm324_vm0, %v299_v46, 0.0 }
  0x25   : > { %v354_v19 = vadd.f32 %v353_v9, %v352_v12  ;;  %v362_v20 = vadd.f32 %v361_v17, %v360_v16  ;;  %v373_v21 = vcombine.low %v329_v59, %v334_v63  ;;  %v374_v23 = vcombine.low %v339_v3, %v344_v7 }
  0x26   : > { %v359_v24 = vadd.f32 %v358_v14, %v357_v15 }
  0x27   : > { %v364_v25 = vadd.f32 %v363_v18, %v362_v20  ;;  %v375_v26 = vcombine.low %v349_v11, %v354_v19  ;;  %v383_v27 = vrot.slane %v373_v21, %v630_v22  ;;  %v390_v28 = vrot.slane %v374_v23, %v630_v22 }
  0x29   : > { %v376_v29 = vcombine.low %v359_v24, %v364_v25  ;;  %v397_v31 = vrot.slane %v375_v26, %v630_v22  ;;  %v405_v30 = vcombine.low %v383_v27, %v390_v28 }
  0x2b   : > { %v404_v32 = vrot.slane %v376_v29, %v630_v22  ;;  %v413_v34 = vrot.slane %v405_v30, %v630_v22 }
  0x2d   : > { %v406_v33 = vcombine.low %v397_v31, %v404_v32 }
  0x2f   : > { %v420_v35 = vrot.slane %v406_v33, %v630_v22 }
  0x31   : > { %v421_v36 = vcombine.low %v413_v34, %v420_v35 }
  0x33   : > { %423 = vst [vmem:[%s191_s23] sm:$0xff] %v421_v36 }
  0x34 PF: > { %s12_s11 = sadd.s32 1, %s575_s11   ;;  %s708_s9 = smov %s571_s10 }
  0x35   : > { %p9_p5 = scmp.ge.s32.totalorder %s12_s11, 4   ;;  %s709_s10 = smov %s711_s12 }
  0x37   :  { %11 = sbr.rel (!%p9_p5) target bundleno = 2 (0x2), region = 61 }

</bundles_post_ra>
